<compile_context>
chip_gen: v5e
topology: v5e:2x2
jax: 0.10.0
libtpu: 0.0.40
codegen_flags: <defaults>
</compile_context>

<pallas_src>
import functools
import math

import jax
import jax.numpy as jnp
from jax.experimental import pallas as pl
from jax.experimental.pallas import tpu as pltpu


# ----------------------------------------------------------------------------
# Hardware-aware tiling plan.
# ----------------------------------------------------------------------------
def _vmem_limit_bytes():
    """Scoped-VMEM limit: half the physical capacity, capped at 64 MiB.

    v5e/v6e (128 MiB physical) -> 64 MiB scoped; v7x (64 MiB) -> 32 MiB scoped.
    """
    cap = 128 * 1024 * 1024
    try:
        cap = int(pltpu.get_tpu_info().vmem_capacity_bytes)
    except Exception:
        pass
    return min(cap // 2, 64 * 1024 * 1024)


def _plan_slab(total, itemsize, n_bufs, vmem_limit):
    """Returns (rows, cols, tm, pad) for a lane-dense (rows, cols) slab.

    cols is a multiple of 128, rows and tm are multiples of the dtype-native
    sublane count, tm divides rows, and n_bufs * tm * cols * itemsize stays
    within the scoped-VMEM budget (minus headroom). Prefers pad == 0.
    """
    sub = (8 * 4) // itemsize            # sublane multiple: 8 f32 / 16 bf16 / 32 int8

    # Prefer a cols that makes the slab exactly `total` elements (no pad/unpad
    # copies in the wrapper).
    cols = 128
    for c in (2048, 1024, 512, 256, 128):
        if total % c == 0 and (total // c) % sub == 0:
            cols = c
            break
    rows = -(-total // cols)
    rows = -(-rows // sub) * sub
    pad = rows * cols - total            # 0 in the common case

    # Per-buffer tile budget: the pipeline keeps ~n_bufs tile-sized buffers
    # resident (inputs + outputs, double-buffered). Keep each tile in the
    # 0.5-4 MiB sweet spot (per-step overhead ~0.35 us, roofline plateau).
    headroom = 8 * 1024 * 1024
    tile_budget = (vmem_limit - headroom) // n_bufs
    tile_budget = max(512 * 1024, min(tile_budget, 4 * 1024 * 1024))

    tm = max(sub, (tile_budget // (cols * itemsize)) // sub * sub)
    # Keep >= 2 row blocks when possible so the "parallel" axis can shard
    # across TensorCores (v7x has 2 TCs/chip); harmless on 1-TC chips.
    if rows >= 2 * sub:
        tm = min(tm, max(sub, (rows // 2) // sub * sub))
    tm = min(tm, rows)
    while rows % tm:                     # largest sub-multiple dividing rows
        tm -= sub
    return rows, cols, tm, pad


def _to_slab(a, total, rows, cols, pad):
    flat = a.reshape(total)
    if pad:
        flat = jnp.pad(flat, (0, pad))
    return flat.reshape(rows, cols)


def _from_slab(a2, total, pad, shape):
    if pad:
        return a2.reshape(total + pad)[:total].reshape(shape)
    return a2.reshape(shape)


# ----------------------------------------------------------------------------
# Single-timestep kernel (matches LIF.forward exactly).
# ----------------------------------------------------------------------------
def _lif_kernel(x_ref, mem_ref, syn_ref,
                spk_ref, mem_out_ref, syn_out_ref,
                *, threshold, beta):
    x = x_ref[...]
    mem = mem_ref[...]
    syn = syn_ref[...]

    spk_b = (mem - threshold) > 0.0                 # ATan.forward
    syn_new = beta * syn + x
    reset = jnp.where(spk_b, threshold, 0.0).astype(mem.dtype)
    mem_new = beta * mem + syn_new - reset

    spk_ref[...] = spk_b.astype(spk_ref.dtype)
    mem_out_ref[...] = mem_new
    syn_out_ref[...] = syn_new


@functools.partial(jax.jit, static_argnames=("threshold", "beta"))
def _lif_forward_jit(x, mem, syn, *, threshold, beta):
    orig_shape = x.shape
    total = math.prod(orig_shape)
    itemsize = jnp.dtype(x.dtype).itemsize
    vmem_limit = _vmem_limit_bytes()
    # 3 inputs + 3 outputs, double-buffered by the pipeline -> 12 buffers.
    rows, cols, tm, pad = _plan_slab(total, itemsize, n_bufs=12,
                                     vmem_limit=vmem_limit)

    x2 = _to_slab(x, total, rows, cols, pad)
    mem2 = _to_slab(mem, total, rows, cols, pad)
    syn2 = _to_slab(syn, total, rows, cols, pad)

    kernel = functools.partial(_lif_kernel,
                               threshold=float(threshold), beta=float(beta))

    spec = pl.BlockSpec((tm, cols), lambda i: (i, 0))
    out_sds = jax.ShapeDtypeStruct((rows, cols), x.dtype)
    n_row = rows // tm
    slab = rows * cols

    cost = pl.CostEstimate(flops=5 * slab,
                           transcendentals=0,
                           bytes_accessed=6 * slab * itemsize)

    spk2, mem_new2, syn_new2 = pl.pallas_call(
        kernel,
        out_shape=(out_sds, out_sds, out_sds),
        grid_spec=pltpu.PrefetchScalarGridSpec(
            num_scalar_prefetch=0,
            grid=(n_row,),
            in_specs=[spec, spec, spec],
            out_specs=(spec, spec, spec),
        ),
        compiler_params=pltpu.CompilerParams(
            dimension_semantics=("parallel",),
            vmem_limit_bytes=vmem_limit,
        ),
        input_output_aliases={1: 1, 2: 2},   # mem -> mem_new, syn -> syn_new
        cost_estimate=cost,
    )(x2, mem2, syn2)

    return (_from_slab(spk2, total, pad, orig_shape),
            _from_slab(mem_new2, total, pad, orig_shape),
            _from_slab(syn_new2, total, pad, orig_shape))


def lif_forward(x, mem=None, syn=None, *, threshold=1.0, beta=0.5):
    """Single LIF timestep. Returns (spk, mem_new, syn_new)."""
    if mem is None or mem.shape != x.shape:
        mem = jnp.zeros_like(x)
    if syn is None or syn.shape != x.shape:
        syn = jnp.zeros_like(x)
    return _lif_forward_jit(x, mem, syn,
                            threshold=float(threshold), beta=float(beta))


# ----------------------------------------------------------------------------
# Fused multi-timestep kernel: state stays resident in VMEM across time,
# accumulating directly in the output blocks (out_specs ignore the time axis).
# ----------------------------------------------------------------------------
def _lif_seq_kernel(x_ref, mem0_ref, syn0_ref,
                    spk_ref, mem_ref, syn_ref,
                    *, threshold, beta):
    t = pl.program_id(1)

    @pl.when(t == 0)
    def _():
        mem_ref[...] = mem0_ref[...]
        syn_ref[...] = syn0_ref[...]

    x = x_ref[...]
    mem = mem_ref[...]
    syn = syn_ref[...]

    spk_b = (mem - threshold) > 0.0
    syn_new = beta * syn + x
    reset = jnp.where(spk_b, threshold, 0.0).astype(mem.dtype)
    mem_new = beta * mem + syn_new - reset

    spk_ref[...] = spk_b.astype(spk_ref.dtype)
    mem_ref[...] = mem_new
    syn_ref[...] = syn_new


@functools.partial(jax.jit, static_argnames=("threshold", "beta"))
def _lif_seq_jit(x, mem, syn, *, threshold, beta):
    T = x.shape[0]
    state_shape = x.shape[1:]
    total = math.prod(state_shape)
    itemsize = jnp.dtype(x.dtype).itemsize
    vmem_limit = _vmem_limit_bytes()
    # 3 inputs + 3 outputs, double-buffered -> 12 buffers (mem/syn blocks only
    # refresh per row block, but budget conservatively).
    rows, cols, tm, pad = _plan_slab(total, itemsize, n_bufs=12,
                                     vmem_limit=vmem_limit)
    slab = rows * cols

    if pad:
        xf = jnp.pad(x.reshape(T, total), ((0, 0), (0, pad)))
        x3 = xf.reshape(T, rows, cols)
    else:
        x3 = x.reshape(T, rows, cols)
    mem2 = _to_slab(mem, total, rows, cols, pad)
    syn2 = _to_slab(syn, total, rows, cols, pad)

    kernel = functools.partial(_lif_seq_kernel,
                               threshold=float(threshold), beta=float(beta))

    state_spec = pl.BlockSpec((tm, cols), lambda i, t: (i, 0))
    seq_spec = pl.BlockSpec((None, tm, cols), lambda i, t: (t, i, 0))
    n_row = rows // tm

    cost = pl.CostEstimate(flops=5 * T * slab,
                           transcendentals=0,
                           bytes_accessed=(2 * T + 4) * slab * itemsize)

    spk3, memT2, synT2 = pl.pallas_call(
        kernel,
        out_shape=(jax.ShapeDtypeStruct((T, rows, cols), x.dtype),
                   jax.ShapeDtypeStruct((rows, cols), x.dtype),
                   jax.ShapeDtypeStruct((rows, cols), x.dtype)),
        grid_spec=pltpu.PrefetchScalarGridSpec(
            num_scalar_prefetch=0,
            grid=(n_row, T),                     # time is the inner axis
            in_specs=[seq_spec, state_spec, state_spec],
            out_specs=(seq_spec, state_spec, state_spec),
        ),
        compiler_params=pltpu.CompilerParams(
            dimension_semantics=("parallel", "arbitrary"),
            vmem_limit_bytes=vmem_limit,
        ),
        input_output_aliases={1: 1, 2: 2},       # mem0 -> memT, syn0 -> synT
        cost_estimate=cost,
    )(x3, mem2, syn2)

    if pad:
        spk = spk3.reshape(T, slab)[:, :total].reshape(x.shape)
    else:
        spk = spk3.reshape(x.shape)
    memT = _from_slab(memT2, total, pad, state_shape)
    synT = _from_slab(synT2, total, pad, state_shape)
    return spk, memT, synT


def lif_forward_sequence(x_seq, mem=None, syn=None, *, threshold=1.0, beta=0.5):
    """Run T LIF timesteps fused in one kernel.

    x_seq: (T, *state_shape). Returns (spk_seq, mem_T, syn_T).
    """
    state_shape = x_seq.shape[1:]
    if mem is None or mem.shape != state_shape:
        mem = jnp.zeros(state_shape, x_seq.dtype)
    if syn is None or syn.shape != state_shape:
        syn = jnp.zeros(state_shape, x_seq.dtype)
    return _lif_seq_jit(x_seq, mem, syn,
                        threshold=float(threshold), beta=float(beta))


# ----------------------------------------------------------------------------
# Demo / correctness check
# ----------------------------------------------------------------------------
if __name__ == "__main__":
    key = jax.random.PRNGKey(0)
    B, C, H, W = 2, 4, 16, 16          # NCHW, like the PyTorch usage
    T = 8

    x_seq = jax.random.normal(key, (T, B, C, H, W), dtype=jnp.float32)

    threshold = 1.0
    alpha = 0.7   # only used by the (not-implemented-here) surrogate gradient
    beta = 0.5

    # ---- single-step kernel, stepped twice with carried state (as in PyTorch)
    spk1, mem1, syn1 = lif_forward(x_seq[0], None, None,
                                   threshold=threshold, beta=beta)
    spk2, mem2, syn2 = lif_forward(x_seq[1], mem1, syn1,
                                   threshold=threshold, beta=beta)

    # ---- fused multi-timestep kernel (state resident in VMEM)
    spk_seq, memT, synT = lif_forward_sequence(x_seq,
                                               threshold=threshold, beta=beta)

    jax.block_until_ready((spk1, mem1, syn1, spk2, mem2, syn2,
                           spk_seq, memT, synT))

    # ---- pure-JAX reference (same math as the PyTorch module)
    def ref_step(x, mem, syn):
        spk = (mem - threshold > 0).astype(x.dtype)
        syn_n = beta * syn + x
        mem_n = beta * mem + syn_n - threshold * spk
        return spk, mem_n, syn_n

    r_spk1, r_mem1, r_syn1 = ref_step(x_seq[0],
                                      jnp.zeros_like(x_seq[0]),
                                      jnp.zeros_like(x_seq[0]))
    r_spk2, r_mem2, r_syn2 = ref_step(x_seq[1], r_mem1, r_syn1)

    assert jnp.allclose(spk1, r_spk1)
    assert jnp.allclose(mem1, r_mem1, atol=1e-6)
    assert jnp.allclose(syn1, r_syn1, atol=1e-6)
    assert jnp.allclose(spk2, r_spk2)
    assert jnp.allclose(mem2, r_mem2, atol=1e-6)
    assert jnp.allclose(syn2, r_syn2, atol=1e-6)

    mem_r = jnp.zeros((B, C, H, W), jnp.float32)
    syn_r = jnp.zeros((B, C, H, W), jnp.float32)
    ref_spks = []
    for t in range(T):
        s, mem_r, syn_r = ref_step(x_seq[t], mem_r, syn_r)
        ref_spks.append(s)
    ref_spk_seq = jnp.stack(ref_spks, axis=0)

    assert jnp.allclose(spk_seq, ref_spk_seq)
    assert jnp.allclose(memT, mem_r, atol=1e-6)
    assert jnp.allclose(synT, syn_r, atol=1e-6)

    print("KERNEL_OK")
</pallas_src>

<mosaic_0001>
module attributes {stable_mosaic.version = 11 : i64} {
  func.func @_lif_kernel(%arg0: i32, %arg1: memref<8x256xf32, #tpu.memory_space<vmem>>, %arg2: memref<8x256xf32, #tpu.memory_space<vmem>>, %arg3: memref<8x256xf32, #tpu.memory_space<vmem>>, %arg4: memref<8x256xf32, #tpu.memory_space<vmem>>, %arg5: memref<8x256xf32, #tpu.memory_space<vmem>>, %arg6: memref<8x256xf32, #tpu.memory_space<vmem>>) attributes {dimension_semantics = [#tpu.dimension_semantics<parallel>], iteration_bounds = array<i64: 1>, scalar_prefetch = 0 : i64, scratch_operands = 0 : i64, tpu.core_type = #tpu.core_type<tc>, window_params = [{transform_indices = @transform_0, window_bounds = array<i64: 8, 256>}, {transform_indices = @transform_1, window_bounds = array<i64: 8, 256>}, {transform_indices = @transform_2, window_bounds = array<i64: 8, 256>}, {transform_indices = @transform_3, window_bounds = array<i64: 8, 256>}, {transform_indices = @transform_4, window_bounds = array<i64: 8, 256>}, {transform_indices = @transform_5, window_bounds = array<i64: 8, 256>}]} {
    %c0 = arith.constant 0 : index
    %c0_0 = arith.constant 0 : index
    %0 = vector.load %arg1[%c0, %c0_0] : memref<8x256xf32, #tpu.memory_space<vmem>>, vector<8x256xf32>
    %c0_1 = arith.constant 0 : index
    %c0_2 = arith.constant 0 : index
    %1 = vector.load %arg2[%c0_1, %c0_2] : memref<8x256xf32, #tpu.memory_space<vmem>>, vector<8x256xf32>
    %c0_3 = arith.constant 0 : index
    %c0_4 = arith.constant 0 : index
    %2 = vector.load %arg3[%c0_3, %c0_4] : memref<8x256xf32, #tpu.memory_space<vmem>>, vector<8x256xf32>
    %cst = arith.constant 1.000000e+00 : f32
    %3 = vector.broadcast %cst : f32 to vector<8x256xf32>
    %4 = arith.subf %1, %3 : vector<8x256xf32>
    %cst_5 = arith.constant 0.000000e+00 : f32
    %5 = vector.broadcast %cst_5 : f32 to vector<8x256xf32>
    %6 = arith.cmpf ogt, %4, %5 : vector<8x256xf32>
    %cst_6 = arith.constant 5.000000e-01 : f32
    %7 = vector.broadcast %cst_6 : f32 to vector<8x256xf32>
    %8 = arith.mulf %7, %2 : vector<8x256xf32>
    %9 = arith.addf %8, %0 : vector<8x256xf32>
    %cst_7 = arith.constant 1.000000e+00 : f32
    %cst_8 = arith.constant 0.000000e+00 : f32
    %10 = vector.broadcast %cst_7 : f32 to vector<8x256xf32>
    %11 = vector.broadcast %cst_8 : f32 to vector<8x256xf32>
    %12 = arith.select %6, %10, %11 : vector<8x256xi1>, vector<8x256xf32>
    %cst_9 = arith.constant 5.000000e-01 : f32
    %13 = vector.broadcast %cst_9 : f32 to vector<8x256xf32>
    %14 = arith.mulf %13, %1 : vector<8x256xf32>
    %15 = arith.addf %14, %9 : vector<8x256xf32>
    %16 = arith.subf %15, %12 : vector<8x256xf32>
    %17 = arith.extui %6 : vector<8x256xi1> to vector<8x256xi32>
    %18 = arith.sitofp %17 : vector<8x256xi32> to vector<8x256xf32>
    %c0_10 = arith.constant 0 : index
    %c0_11 = arith.constant 0 : index
    %19 = vector.load %arg4[%c0_10, %c0_11] : memref<8x256xf32, #tpu.memory_space<vmem>>, vector<8x256xf32>
    tpu.vector_store %arg4[%c0_10, %c0_11], %18 {strides = array<i32>} : memref<8x256xf32, #tpu.memory_space<vmem>>, vector<8x256xf32>,
    %c0_12 = arith.constant 0 : index
    %c0_13 = arith.constant 0 : index
    %20 = vector.load %arg5[%c0_12, %c0_13] : memref<8x256xf32, #tpu.memory_space<vmem>>, vector<8x256xf32>
    tpu.vector_store %arg5[%c0_12, %c0_13], %16 {strides = array<i32>} : memref<8x256xf32, #tpu.memory_space<vmem>>, vector<8x256xf32>,
    %c0_14 = arith.constant 0 : index
    %c0_15 = arith.constant 0 : index
    %21 = vector.load %arg6[%c0_14, %c0_15] : memref<8x256xf32, #tpu.memory_space<vmem>>, vector<8x256xf32>
    tpu.vector_store %arg6[%c0_14, %c0_15], %9 {strides = array<i32>} : memref<8x256xf32, #tpu.memory_space<vmem>>, vector<8x256xf32>,
    return
  }
  func.func @transform_0(%arg0: i32) -> (i32, i32) {
    %c0_i32 = arith.constant 0 : i32
    %c0_i32_0 = arith.constant 0 : i32
    return %arg0, %c0_i32 : i32, i32
  }
  func.func @transform_1(%arg0: i32) -> (i32, i32) {
    %c0_i32 = arith.constant 0 : i32
    %c0_i32_0 = arith.constant 0 : i32
    return %arg0, %c0_i32 : i32, i32
  }
  func.func @transform_2(%arg0: i32) -> (i32, i32) {
    %c0_i32 = arith.constant 0 : i32
    %c0_i32_0 = arith.constant 0 : i32
    return %arg0, %c0_i32 : i32, i32
  }
  func.func @transform_3(%arg0: i32) -> (i32, i32) {
    %c0_i32 = arith.constant 0 : i32
    %c0_i32_0 = arith.constant 0 : i32
    return %arg0, %c0_i32 : i32, i32
  }
  func.func @transform_4(%arg0: i32) -> (i32, i32) {
    %c0_i32 = arith.constant 0 : i32
    %c0_i32_0 = arith.constant 0 : i32
    return %arg0, %c0_i32 : i32, i32
  }
  func.func @transform_5(%arg0: i32) -> (i32, i32) {
    %c0_i32 = arith.constant 0 : i32
    %c0_i32_0 = arith.constant 0 : i32
    return %arg0, %c0_i32 : i32, i32
  }
}

</mosaic_0001>

<bundles_post_ra>
// kernel: _lif_forward_jit.1
= control target key start
LH: loop header
LB: loop body
LE: loop exit
PB: predicated region body
PF: predicated region fallthrough
CT: control target
= control target key end

     0   :  { %v66_v13 = vmov 0.0   ;;  %s133_s0 = inlined_call_operand.vmem [shape: f32[8,256], index: 0, kind: input, shape index: {}]   ;;  %s134_s1 = inlined_call_operand.vmem [shape: f32[8,256], index: 1, kind: input, shape index: {}, may-alias: {1,4}]   ;;  %s135_s2 = inlined_call_operand.vmem [shape: f32[8,256], index: 2, kind: input, shape index: {}, may-alias: {2,5}]   ;;  %s136_s3 = inlined_call_operand.vmem [shape: f32[8,256], index: 3, kind: output, shape index: {0}]   ;;  %s137_s5 = inlined_call_operand.vmem [shape: f32[8,256], index: 5, kind: output, shape index: {2}, may-alias: {2,5}]   ;;  %s138_s4 = inlined_call_operand.vmem [shape: f32[8,256], index: 4, kind: output, shape index: {1}, may-alias: {1,4}]  }
   0x1   :  { %v17_v0 = vld [vmem:[%s133_s0] sm:$0xff]  ;;  %v18_v6 = vld [vmem:[%s133_s0 + $0x8] sm:$0xff] }
   0x2   :  { %v19_v1 = vld [vmem:[%s134_s1] sm:$0xff]  ;;  %v20_v7 = vld [vmem:[%s134_s1 + $0x8] sm:$0xff] }
   0x3   :  { %v21_v2 = vld [vmem:[%s135_s2] sm:$0xff]  ;;  %v61_v3 = vadd.f32 -1.0, %v19_v1  ;;  %v33_v5 = vmul.f32 0.5, %v19_v1  ;;  %v22_v8 = vld [vmem:[%s135_s2 + $0x8] sm:$0xff]  ;;  %v62_v9 = vadd.f32 -1.0, %v20_v7  ;;  %v34_v11 = vmul.f32 0.5, %v20_v7 }
   0x4   :  { %v27_v4 = vmul.f32 0.5, %v21_v2  ;;  %v28_v10 = vmul.f32 0.5, %v22_v8 }
   0x5   :  { %vm25_vm0 = vcmp.gt.f32.partialorder %v61_v3, 0.0  ;;  %vm26_vm1 = vcmp.gt.f32.partialorder %v62_v9, 0.0 }
   0x6   :  { %v29_v12 = vadd.f32 %v27_v4, %v17_v0  ;;  %v31_v14 = vsel %vm25_vm0, 1.0, %v66_v13  ;;  %v30_v15 = vadd.f32 %v28_v10, %v18_v6  ;;  %v32_v17 = vsel %vm26_vm1, 1.0, %v66_v13 }
   0x7   :  { %43 = vst [vmem:[%s136_s3] sm:$0xff] %v31_v14 }
   0x8   :  { %v35_v16 = vadd.f32 %v33_v5, %v29_v12  ;;  %v36_v18 = vadd.f32 %v34_v11, %v30_v15  ;;  %44 = vst [vmem:[%s136_s3 + $0x8] sm:$0xff] %v32_v17 }
   0x9   :  { %47 = vst [vmem:[%s137_s5] sm:$0xff] %v29_v12 }
   0xa   :  { %v37_v19 = vsub.f32 %v35_v16, %v31_v14  ;;  %v38_v20 = vsub.f32 %v36_v18, %v32_v17  ;;  %48 = vst [vmem:[%s137_s5 + $0x8] sm:$0xff] %v30_v15 }
   0xc   :  { %45 = vst [vmem:[%s138_s4] sm:$0xff] %v37_v19 }
   0xd   :  { %46 = vst [vmem:[%s138_s4 + $0x8] sm:$0xff] %v38_v20 }

</bundles_post_ra>
